<compile_context>
chip_gen: v7x
topology: tpu7x:2x2x1
jax: 0.10.0
libtpu: 0.0.40
codegen_flags: <defaults>
</compile_context>

<pallas_src>
import functools

import jax
import jax.numpy as jnp
from jax.experimental import pallas as pl
from jax.experimental.pallas import tpu as pltpu

LANE = 128          # TPU lane width; all feature dims are padded to this
NEG_INF = -1e30     # bias for padded class columns -> exp() == 0 in softmax


def _pad_to(x, size, axis, value=0.0):
    pad = [(0, 0)] * x.ndim
    pad[axis] = (0, size - x.shape[axis])
    return jnp.pad(x, pad, constant_values=value)


def _round_up(n, m):
    return ((n + m - 1) // m) * m


# ----------------------------------------------------------------------------
# Single fused kernel: conv1+relu -> conv2+relu -> linear -> log_softmax
# ----------------------------------------------------------------------------
def fused_chebnet_kernel(L_hbm_ref, x_ref, w1_ref, b1_ref, w2_ref, b2_ref,
                         wl_ref, bl_ref, o_ref, L_vmem, stack_ref, dma_sem, *, K):
    """Refs:
      L_hbm_ref : [N, N]        bf16  scaled Laplacian, left in HBM (pl.ANY)
      x_ref     : [N, 128]      f32   node features, zero-padded lanes
      w1/w2     : [K*128, 128]  bf16  per-order ChebConv weights stacked row-wise
      b1/b2     : [1, 128]      f32
      wl_ref    : [128, 128]    bf16  Linear weight ([in, out], zero-padded)
      bl_ref    : [1, 128]      f32   Linear bias (-1e30 in padded class columns)
      o_ref     : [N, 128]      f32   log_softmax output (valid classes [:, :C])
      L_vmem    : [N, N]        bf16  VMEM scratch: single-buffered resident L
      stack_ref : [N, K*128]    bf16  VMEM scratch holding [Tx0 | Tx1 | ... ]
      dma_sem   : DMA semaphore for the one L copy
    """
    # grid=(1,) has nothing to pipeline, so a blocked BlockSpec would still
    # double-buffer the big L matrix.  Instead L stays in HBM and we issue one
    # manual DMA into a single VMEM scratch buffer.
    cp = pltpu.make_async_copy(L_hbm_ref, L_vmem, dma_sem)
    cp.start()
    cp.wait()
    L = L_vmem[...]                       # bf16, resident for both conv layers

    def cheb_conv_relu(h, w_ref, b_ref):
        # Chebyshev recursion: Tx0 = h, Tx1 = L h, Tx_k = 2 L Tx_{k-1} - Tx_{k-2}.
        # Recursion runs in f32; orders are written bf16 into the
        # lane-concatenated slab so the K per-order matmuls collapse into ONE
        # wide bf16 MXU dot with f32 accumulation.
        Tx0 = h
        stack_ref[:, 0:LANE] = Tx0.astype(jnp.bfloat16)
        if K > 1:
            Tx1 = jnp.dot(L, Tx0.astype(jnp.bfloat16),
                          preferred_element_type=jnp.float32)
            stack_ref[:, LANE:2 * LANE] = Tx1.astype(jnp.bfloat16)
            for k in range(2, K):
                Tx2 = 2.0 * jnp.dot(L, Tx1.astype(jnp.bfloat16),
                                    preferred_element_type=jnp.float32) - Tx0
                stack_ref[:, k * LANE:(k + 1) * LANE] = Tx2.astype(jnp.bfloat16)
                Tx0, Tx1 = Tx1, Tx2
        out = jnp.dot(stack_ref[...], w_ref[...],
                      preferred_element_type=jnp.float32)
        return jnp.maximum(out + b_ref[...], 0.0)        # fused bias + ReLU (f32)

    # TODO(synk): dropout omitted — module evaluated in eval mode (identity);
    # training-mode dropout would use pltpu.prng_seed / prng_random_bits.
    h = cheb_conv_relu(x_ref[...], w1_ref, b1_ref)       # conv1 + relu
    h = cheb_conv_relu(h, w2_ref, b2_ref)                # conv2 + relu

    # Final Linear (bf16 operands, f32 accumulate) + stable log_softmax(dim=1).
    z = jnp.dot(h.astype(jnp.bfloat16), wl_ref[...],
                preferred_element_type=jnp.float32) + bl_ref[...]
    m = jnp.max(z, axis=-1, keepdims=True)
    s = z - m
    # Padded class columns carry bias -1e30 -> exp == 0, so the lse over the
    # padded 128-wide row equals the lse over the true classes.
    lse = jnp.log(jnp.sum(jnp.exp(s), axis=-1, keepdims=True))   # exp/log on EUP
    o_ref[...] = s - lse


# ----------------------------------------------------------------------------
# Host wrappers (one-time prep + jitted forward)
# ----------------------------------------------------------------------------
def pack_params(params, K):
    """One-time host prep: pad feature dims to 128 lanes, flatten the K
    Chebyshev weight slices row-wise, and pre-cast matmul operands to bf16."""
    W1 = _pad_to(_pad_to(params["W1"], LANE, 1), LANE, 2).reshape(K * LANE, LANE)
    W2 = _pad_to(_pad_to(params["W2"], LANE, 1), LANE, 2).reshape(K * LANE, LANE)
    Wl = _pad_to(_pad_to(params["Wl"], LANE, 0), LANE, 1)
    b1 = _pad_to(params["b1"].reshape(1, -1), LANE, 1)
    b2 = _pad_to(params["b2"].reshape(1, -1), LANE, 1)
    bl = _pad_to(params["bl"].reshape(1, -1), LANE, 1, value=NEG_INF)
    return {"W1": W1.astype(jnp.bfloat16), "b1": b1,
            "W2": W2.astype(jnp.bfloat16), "b2": b2,
            "Wl": Wl.astype(jnp.bfloat16), "bl": bl}


def prep_laplacian(Lhat):
    """One-time host prep: pad N to a multiple of 8 (sublane-dense) and cast
    to bf16 so the per-call forward never re-reads L in f32."""
    N = Lhat.shape[0]
    Np = _round_up(N, 8)
    return _pad_to(_pad_to(Lhat, Np, 0), Np, 1).astype(jnp.bfloat16)


@functools.partial(jax.jit, static_argnames=("K", "num_classes"))
def cheb_network_forward(L_bf16, x, packed, *, K, num_classes):
    """L_bf16: [Np, Np] bf16 from prep_laplacian; x: [N, Fin] f32."""
    N = x.shape[0]
    Np = L_bf16.shape[0]
    x_pad = _pad_to(_pad_to(x, LANE, 1), Np, 0)

    flops = (2 * (K - 1) * 2 * Np * Np * LANE          # L @ Tx (both conv layers)
             + 2 * 2 * Np * (K * LANE) * LANE          # two stacked weight dots
             + 2 * Np * LANE * LANE)                   # final linear
    bytes_accessed = (2 * Np * Np                      # L read once (bf16)
                      + 4 * Np * LANE + 4 * Np * LANE  # x in, out
                      + 2 * (2 * K + 1) * LANE * LANE  # bf16 weights
                      + 4 * 3 * LANE)                  # biases
    cost = pl.CostEstimate(flops=flops,
                           transcendentals=Np * (LANE + 1),
                           bytes_accessed=bytes_accessed)

    # Explicit VMEM budget: single-buffered L scratch + bf16 Tx slab +
    # double-buffered small inputs/outputs + headroom.
    vmem_bytes = (Np * Np * 2                          # resident L (bf16, 1 buf)
                  + Np * K * LANE * 2                  # Tx slab (bf16)
                  + 2 * Np * LANE * 4                  # x (f32, 2 bufs)
                  + 2 * Np * LANE * 4                  # out (f32, 2 bufs)
                  + 2 * 2 * (2 * K + 1) * LANE * LANE  # W1/W2/Wl (bf16, 2 bufs)
                  + 2 * 3 * 8 * LANE * 4               # biases (tile padded)
                  + (8 << 20))                         # headroom

    kern = functools.partial(fused_chebnet_kernel, K=K)
    out_pad = pl.pallas_call(
        kern,
        out_shape=jax.ShapeDtypeStruct((Np, LANE), jnp.float32),
        grid=(1,),
        in_specs=[
            pl.BlockSpec(memory_space=pl.ANY),                 # Lhat: stays in HBM
            pl.BlockSpec((Np, LANE), lambda i: (0, 0)),        # x
            pl.BlockSpec((K * LANE, LANE), lambda i: (0, 0)),  # W1 flat (bf16)
            pl.BlockSpec((1, LANE), lambda i: (0, 0)),         # b1
            pl.BlockSpec((K * LANE, LANE), lambda i: (0, 0)),  # W2 flat (bf16)
            pl.BlockSpec((1, LANE), lambda i: (0, 0)),         # b2
            pl.BlockSpec((LANE, LANE), lambda i: (0, 0)),      # Wl (bf16)
            pl.BlockSpec((1, LANE), lambda i: (0, 0)),         # bl
        ],
        out_specs=pl.BlockSpec((Np, LANE), lambda i: (0, 0)),  # lane-dense slab
        scratch_shapes=[
            pltpu.VMEM((Np, Np), jnp.bfloat16),         # single-buffered L
            pltpu.VMEM((Np, K * LANE), jnp.bfloat16),   # Chebyshev Tx slab
            pltpu.SemaphoreType.DMA,                    # L copy semaphore
        ],
        compiler_params=pltpu.CompilerParams(
            dimension_semantics=("arbitrary",),
            vmem_limit_bytes=int(vmem_bytes)),
        cost_estimate=cost,
    )(L_bf16, x_pad, packed["W1"], packed["b1"], packed["W2"], packed["b2"],
      packed["Wl"], packed["bl"])
    return out_pad[:N, :num_classes]


# ----------------------------------------------------------------------------
# Graph operator, params, and a pure-JAX reference for validation
# ----------------------------------------------------------------------------
def build_scaled_laplacian(edge_index, num_nodes):
    """Lhat = 2*L_sym/lambda_max - I with lambda_max=2 => -D^{-1/2} A D^{-1/2}."""
    row, col = edge_index
    A = jnp.zeros((num_nodes, num_nodes), jnp.float32).at[row, col].set(1.0)
    A = A * (1.0 - jnp.eye(num_nodes, dtype=jnp.float32))    # remove self loops
    deg = jnp.sum(A, axis=1)
    dinv = jnp.where(deg > 0, 1.0 / jnp.sqrt(deg), 0.0)      # inf -> 0 (PyG)
    return -(dinv[:, None] * A * dinv[None, :])


def glorot(key, shape):
    fan_in, fan_out = shape[-2], shape[-1]
    lim = jnp.sqrt(6.0 / (fan_in + fan_out))
    return jax.random.uniform(key, shape, jnp.float32, -lim, lim)


def init_params(key, num_features, hidden, num_classes, K):
    k = jax.random.split(key, 4)
    return {
        "W1": glorot(k[0], (K, num_features, hidden)),
        "b1": jnp.zeros((hidden,), jnp.float32),
        "W2": glorot(k[1], (K, hidden, 2 * hidden)),
        "b2": jnp.zeros((2 * hidden,), jnp.float32),
        "Wl": glorot(k[2], (2 * hidden, num_classes)),   # stored transposed [in, out]
        "bl": 0.01 * jax.random.normal(k[3], (num_classes,), jnp.float32),
    }


def reference_forward(params, x, Lhat, K):
    def cheb(h, W, b):
        Tx0 = h
        out = Tx0 @ W[0]
        if K > 1:
            Tx1 = Lhat @ Tx0
            out = out + Tx1 @ W[1]
            for k in range(2, K):
                Tx2 = 2.0 * (Lhat @ Tx1) - Tx0
                out = out + Tx2 @ W[k]
                Tx0, Tx1 = Tx1, Tx2
        return jax.nn.relu(out + b)
    h = cheb(x, params["W1"], params["b1"])
    h = cheb(h, params["W2"], params["b2"])
    z = h @ params["Wl"] + params["bl"]
    return jax.nn.log_softmax(z, axis=1)


if __name__ == "__main__":
    key = jax.random.PRNGKey(0)
    k_x, k_e, k_p = jax.random.split(key, 3)

    # Small synthetic graph: N nodes, num_features, K=3, hidden=32, 8 classes.
    N = 64
    NUM_FEATURES = 16
    HIDDEN = 32
    NUM_CLASSES = 8
    K = 3  # graph_filters

    x = jax.random.normal(k_x, (N, NUM_FEATURES), jnp.float32)

    # Symmetric edge set (ring + random extra edges) as edge_index [2, E].
    ring_src = jnp.arange(N)
    ring_dst = (jnp.arange(N) + 1) % N
    rnd_src = jax.random.randint(k_e, (2 * N,), 0, N)
    rnd_dst = jax.random.randint(jax.random.fold_in(k_e, 1), (2 * N,), 0, N)
    src = jnp.concatenate([ring_src, ring_dst, rnd_src, rnd_dst])
    dst = jnp.concatenate([ring_dst, ring_src, rnd_dst, rnd_src])
    edge_index = jnp.stack([src, dst])

    Lhat = build_scaled_laplacian(edge_index, N)
    params = init_params(k_p, NUM_FEATURES, HIDDEN, NUM_CLASSES, K)

    # One-time host prep (NOT part of the per-call forward).
    packed = pack_params(params, K)
    L_bf16 = prep_laplacian(Lhat)

    out = cheb_network_forward(L_bf16, x, packed, K=K, num_classes=NUM_CLASSES)
    out = jax.block_until_ready(out)

    assert out.shape == (N, NUM_CLASSES)
    # log_softmax rows must sum to ~1 in prob space.
    assert jnp.allclose(jnp.sum(jnp.exp(out), axis=1), 1.0, atol=1e-4)

    # Reference with the same bf16-rounded L and weights; the kernel
    # additionally rounds intermediate activations to bf16 for the MXU,
    # hence the tolerance below.
    def _q(a):
        return a.astype(jnp.bfloat16).astype(jnp.float32)
    ref_params = dict(params)
    for name in ("W1", "W2", "Wl"):
        ref_params[name] = _q(params[name])
    L_ref = Lhat.astype(jnp.bfloat16).astype(jnp.float32)
    ref = reference_forward(ref_params, x, L_ref, K)
    err = float(jnp.max(jnp.abs(out - ref)))
    assert err < 1e-1, err

    print("KERNEL_OK")
</pallas_src>

<mosaic_0001>
module attributes {stable_mosaic.version = 11 : i64} {
  func.func @fused_chebnet_kernel(%arg0: i32, %arg1: memref<64x64xbf16, #tpu.memory_space<any>>, %arg2: memref<64x128xf32, #tpu.memory_space<vmem>>, %arg3: memref<384x128xbf16, #tpu.memory_space<vmem>>, %arg4: memref<1x128xf32, #tpu.memory_space<vmem>>, %arg5: memref<384x128xbf16, #tpu.memory_space<vmem>>, %arg6: memref<1x128xf32, #tpu.memory_space<vmem>>, %arg7: memref<128x128xbf16, #tpu.memory_space<vmem>>, %arg8: memref<1x128xf32, #tpu.memory_space<vmem>>, %arg9: memref<64x128xf32, #tpu.memory_space<vmem>>, %arg10: memref<64x64xbf16, #tpu.memory_space<vmem>>, %arg11: memref<64x384xbf16, #tpu.memory_space<vmem>>, %arg12: memref<!tpu.dma_semaphore, #tpu.memory_space<semaphore_mem>>) attributes {dimension_semantics = [#tpu.dimension_semantics<arbitrary>], iteration_bounds = array<i64: 1>, scalar_prefetch = 0 : i64, scratch_operands = 3 : i64, tpu.core_type = #tpu.core_type<tc>, window_params = [{}, {pipeline_mode = #tpu.pipeline_mode<synchronous>, transform_indices = @transform_1, window_bounds = array<i64: 64, 128>}, {pipeline_mode = #tpu.pipeline_mode<synchronous>, transform_indices = @transform_2, window_bounds = array<i64: 384, 128>}, {pipeline_mode = #tpu.pipeline_mode<synchronous>, transform_indices = @transform_3, window_bounds = array<i64: 1, 128>}, {pipeline_mode = #tpu.pipeline_mode<synchronous>, transform_indices = @transform_4, window_bounds = array<i64: 384, 128>}, {pipeline_mode = #tpu.pipeline_mode<synchronous>, transform_indices = @transform_5, window_bounds = array<i64: 1, 128>}, {pipeline_mode = #tpu.pipeline_mode<synchronous>, transform_indices = @transform_6, window_bounds = array<i64: 128, 128>}, {pipeline_mode = #tpu.pipeline_mode<synchronous>, transform_indices = @transform_7, window_bounds = array<i64: 1, 128>}, {pipeline_mode = #tpu.pipeline_mode<synchronous>, transform_indices = @transform_8, window_bounds = array<i64: 64, 128>}]} {
    tpu.enqueue_dma source(%arg1 : memref<64x64xbf16, #tpu.memory_space<any>>) target(%arg10 : memref<64x64xbf16, #tpu.memory_space<vmem>>) target_semaphore(%arg12 : memref<!tpu.dma_semaphore, #tpu.memory_space<semaphore_mem>>)
    tpu.wait_dma2 semaphore(%arg12 : memref<!tpu.dma_semaphore, #tpu.memory_space<semaphore_mem>>) src(%arg1 : memref<64x64xbf16, #tpu.memory_space<any>>) dst(%arg10 : memref<64x64xbf16, #tpu.memory_space<vmem>>)
    %c0 = arith.constant 0 : index
    %c0_0 = arith.constant 0 : index
    %0 = vector.load %arg10[%c0, %c0_0] : memref<64x64xbf16, #tpu.memory_space<vmem>>, vector<64x64xbf16>
    %c0_1 = arith.constant 0 : index
    %c0_2 = arith.constant 0 : index
    %1 = vector.load %arg2[%c0_1, %c0_2] : memref<64x128xf32, #tpu.memory_space<vmem>>, vector<64x128xf32>
    %2 = arith.truncf %1 : vector<64x128xf32> to vector<64x128xbf16>
    %c0_3 = arith.constant 0 : index
    %c0_4 = arith.constant 0 : index
    %3 = vector.load %arg11[%c0_3, %c0_4] : memref<64x384xbf16, #tpu.memory_space<vmem>>, vector<64x128xbf16>
    tpu.vector_store %arg11[%c0_3, %c0_4], %2 {strides = array<i32>} : memref<64x384xbf16, #tpu.memory_space<vmem>>, vector<64x128xbf16>,
    %4 = arith.truncf %1 : vector<64x128xf32> to vector<64x128xbf16>
    %cst = arith.constant dense<0.000000e+00> : vector<64x128xf32>
    %5 = tpu.matmul %0, %4, %cst {dimension_numbers = #tpu.dot_dimension_numbers<[1], [0], [0], [1], [0, 0, 1, 1], [], []>} : vector<64x64xbf16>, vector<64x128xbf16>, vector<64x128xf32> -> vector<64x128xf32>
    %6 = arith.truncf %5 : vector<64x128xf32> to vector<64x128xbf16>
    %c0_5 = arith.constant 0 : index
    %c128 = arith.constant 128 : index
    %7 = vector.load %arg11[%c0_5, %c128] : memref<64x384xbf16, #tpu.memory_space<vmem>>, vector<64x128xbf16>
    tpu.vector_store %arg11[%c0_5, %c128], %6 {strides = array<i32>} : memref<64x384xbf16, #tpu.memory_space<vmem>>, vector<64x128xbf16>,
    %8 = arith.truncf %5 : vector<64x128xf32> to vector<64x128xbf16>
    %cst_6 = arith.constant dense<0.000000e+00> : vector<64x128xf32>
    %9 = tpu.matmul %0, %8, %cst_6 {dimension_numbers = #tpu.dot_dimension_numbers<[1], [0], [0], [1], [0, 0, 1, 1], [], []>} : vector<64x64xbf16>, vector<64x128xbf16>, vector<64x128xf32> -> vector<64x128xf32>
    %cst_7 = arith.constant 2.000000e+00 : f32
    %10 = vector.broadcast %cst_7 : f32 to vector<64x128xf32>
    %11 = arith.mulf %10, %9 : vector<64x128xf32>
    %12 = arith.subf %11, %1 : vector<64x128xf32>
    %13 = arith.truncf %12 : vector<64x128xf32> to vector<64x128xbf16>
    %c0_8 = arith.constant 0 : index
    %c256 = arith.constant 256 : index
    %14 = vector.load %arg11[%c0_8, %c256] : memref<64x384xbf16, #tpu.memory_space<vmem>>, vector<64x128xbf16>
    tpu.vector_store %arg11[%c0_8, %c256], %13 {strides = array<i32>} : memref<64x384xbf16, #tpu.memory_space<vmem>>, vector<64x128xbf16>,
    %c0_9 = arith.constant 0 : index
    %c0_10 = arith.constant 0 : index
    %15 = vector.load %arg11[%c0_9, %c0_10] : memref<64x384xbf16, #tpu.memory_space<vmem>>, vector<64x384xbf16>
    %c0_11 = arith.constant 0 : index
    %c0_12 = arith.constant 0 : index
    %16 = vector.load %arg3[%c0_11, %c0_12] : memref<384x128xbf16, #tpu.memory_space<vmem>>, vector<384x128xbf16>
    %cst_13 = arith.constant dense<0.000000e+00> : vector<64x128xf32>
    %17 = tpu.matmul %15, %16, %cst_13 {dimension_numbers = #tpu.dot_dimension_numbers<[1], [0], [0], [1], [0, 0, 1, 1], [], []>} : vector<64x384xbf16>, vector<384x128xbf16>, vector<64x128xf32> -> vector<64x128xf32>
    %c0_14 = arith.constant 0 : index
    %c0_15 = arith.constant 0 : index
    %18 = vector.load %arg4[%c0_14, %c0_15] : memref<1x128xf32, #tpu.memory_space<vmem>>, vector<1x128xf32>
    %19 = vector.broadcast %18 : vector<1x128xf32> to vector<64x128xf32>
    %20 = arith.addf %17, %19 : vector<64x128xf32>
    %cst_16 = arith.constant 0.000000e+00 : f32
    %21 = vector.broadcast %cst_16 : f32 to vector<64x128xf32>
    %22 = arith.maximumf %20, %21 : vector<64x128xf32>
    %23 = arith.truncf %22 : vector<64x128xf32> to vector<64x128xbf16>
    %c0_17 = arith.constant 0 : index
    %c0_18 = arith.constant 0 : index
    %24 = vector.load %arg11[%c0_17, %c0_18] : memref<64x384xbf16, #tpu.memory_space<vmem>>, vector<64x128xbf16>
    tpu.vector_store %arg11[%c0_17, %c0_18], %23 {strides = array<i32>} : memref<64x384xbf16, #tpu.memory_space<vmem>>, vector<64x128xbf16>,
    %25 = arith.truncf %22 : vector<64x128xf32> to vector<64x128xbf16>
    %cst_19 = arith.constant dense<0.000000e+00> : vector<64x128xf32>
    %26 = tpu.matmul %0, %25, %cst_19 {dimension_numbers = #tpu.dot_dimension_numbers<[1], [0], [0], [1], [0, 0, 1, 1], [], []>} : vector<64x64xbf16>, vector<64x128xbf16>, vector<64x128xf32> -> vector<64x128xf32>
    %27 = arith.truncf %26 : vector<64x128xf32> to vector<64x128xbf16>
    %c0_20 = arith.constant 0 : index
    %c128_21 = arith.constant 128 : index
    %28 = vector.load %arg11[%c0_20, %c128_21] : memref<64x384xbf16, #tpu.memory_space<vmem>>, vector<64x128xbf16>
    tpu.vector_store %arg11[%c0_20, %c128_21], %27 {strides = array<i32>} : memref<64x384xbf16, #tpu.memory_space<vmem>>, vector<64x128xbf16>,
    %29 = arith.truncf %26 : vector<64x128xf32> to vector<64x128xbf16>
    %cst_22 = arith.constant dense<0.000000e+00> : vector<64x128xf32>
    %30 = tpu.matmul %0, %29, %cst_22 {dimension_numbers = #tpu.dot_dimension_numbers<[1], [0], [0], [1], [0, 0, 1, 1], [], []>} : vector<64x64xbf16>, vector<64x128xbf16>, vector<64x128xf32> -> vector<64x128xf32>
    %cst_23 = arith.constant 2.000000e+00 : f32
    %31 = vector.broadcast %cst_23 : f32 to vector<64x128xf32>
    %32 = arith.mulf %31, %30 : vector<64x128xf32>
    %33 = arith.subf %32, %22 : vector<64x128xf32>
    %34 = arith.truncf %33 : vector<64x128xf32> to vector<64x128xbf16>
    %c0_24 = arith.constant 0 : index
    %c256_25 = arith.constant 256 : index
    %35 = vector.load %arg11[%c0_24, %c256_25] : memref<64x384xbf16, #tpu.memory_space<vmem>>, vector<64x128xbf16>
    tpu.vector_store %arg11[%c0_24, %c256_25], %34 {strides = array<i32>} : memref<64x384xbf16, #tpu.memory_space<vmem>>, vector<64x128xbf16>,
    %c0_26 = arith.constant 0 : index
    %c0_27 = arith.constant 0 : index
    %36 = vector.load %arg11[%c0_26, %c0_27] : memref<64x384xbf16, #tpu.memory_space<vmem>>, vector<64x384xbf16>
    %c0_28 = arith.constant 0 : index
    %c0_29 = arith.constant 0 : index
    %37 = vector.load %arg5[%c0_28, %c0_29] : memref<384x128xbf16, #tpu.memory_space<vmem>>, vector<384x128xbf16>
    %cst_30 = arith.constant dense<0.000000e+00> : vector<64x128xf32>
    %38 = tpu.matmul %36, %37, %cst_30 {dimension_numbers = #tpu.dot_dimension_numbers<[1], [0], [0], [1], [0, 0, 1, 1], [], []>} : vector<64x384xbf16>, vector<384x128xbf16>, vector<64x128xf32> -> vector<64x128xf32>
    %c0_31 = arith.constant 0 : index
    %c0_32 = arith.constant 0 : index
    %39 = vector.load %arg6[%c0_31, %c0_32] : memref<1x128xf32, #tpu.memory_space<vmem>>, vector<1x128xf32>
    %40 = vector.broadcast %39 : vector<1x128xf32> to vector<64x128xf32>
    %41 = arith.addf %38, %40 : vector<64x128xf32>
    %cst_33 = arith.constant 0.000000e+00 : f32
    %42 = vector.broadcast %cst_33 : f32 to vector<64x128xf32>
    %43 = arith.maximumf %41, %42 : vector<64x128xf32>
    %44 = arith.truncf %43 : vector<64x128xf32> to vector<64x128xbf16>
    %c0_34 = arith.constant 0 : index
    %c0_35 = arith.constant 0 : index
    %45 = vector.load %arg7[%c0_34, %c0_35] : memref<128x128xbf16, #tpu.memory_space<vmem>>, vector<128x128xbf16>
    %cst_36 = arith.constant dense<0.000000e+00> : vector<64x128xf32>
    %46 = tpu.matmul %44, %45, %cst_36 {dimension_numbers = #tpu.dot_dimension_numbers<[1], [0], [0], [1], [0, 0, 1, 1], [], []>} : vector<64x128xbf16>, vector<128x128xbf16>, vector<64x128xf32> -> vector<64x128xf32>
    %c0_37 = arith.constant 0 : index
    %c0_38 = arith.constant 0 : index
    %47 = vector.load %arg8[%c0_37, %c0_38] : memref<1x128xf32, #tpu.memory_space<vmem>>, vector<1x128xf32>
    %48 = vector.broadcast %47 : vector<1x128xf32> to vector<64x128xf32>
    %49 = arith.addf %46, %48 : vector<64x128xf32>
    %cst_39 = arith.constant dense<0xFF800000> : vector<64xf32>
    %50 = vector.multi_reduction <maximumf>, %49, %cst_39 [1] : vector<64x128xf32> to vector<64xf32>
    %51 = vector.shape_cast %50 : vector<64xf32> to vector<64x1xf32>
    %52 = vector.broadcast %51 : vector<64x1xf32> to vector<64x128xf32>
    %53 = arith.subf %49, %52 : vector<64x128xf32>
    %54 = math.exp %53 : vector<64x128xf32>
    %cst_40 = arith.constant dense<0.000000e+00> : vector<64xf32>
    %55 = vector.multi_reduction <add>, %54, %cst_40 [1] : vector<64x128xf32> to vector<64xf32>
    %56 = vector.shape_cast %55 : vector<64xf32> to vector<64x1xf32>
    %57 = math.log %56 : vector<64x1xf32>
    %58 = vector.broadcast %57 : vector<64x1xf32> to vector<64x128xf32>
    %59 = arith.subf %53, %58 : vector<64x128xf32>
    %c0_41 = arith.constant 0 : index
    %c0_42 = arith.constant 0 : index
    %60 = vector.load %arg9[%c0_41, %c0_42] : memref<64x128xf32, #tpu.memory_space<vmem>>, vector<64x128xf32>
    tpu.vector_store %arg9[%c0_41, %c0_42], %59 {strides = array<i32>} : memref<64x128xf32, #tpu.memory_space<vmem>>, vector<64x128xf32>,
    return
  }
  func.func @transform_1(%arg0: i32) -> (i32, i32) {
    %c0_i32 = arith.constant 0 : i32
    %c0_i32_0 = arith.constant 0 : i32
    %c0_i32_1 = arith.constant 0 : i32
    return %c0_i32, %c0_i32_0 : i32, i32
  }
  func.func @transform_2(%arg0: i32) -> (i32, i32) {
    %c0_i32 = arith.constant 0 : i32
    %c0_i32_0 = arith.constant 0 : i32
    %c0_i32_1 = arith.constant 0 : i32
    return %c0_i32, %c0_i32_0 : i32, i32
  }
  func.func @transform_3(%arg0: i32) -> (i32, i32) {
    %c0_i32 = arith.constant 0 : i32
    %c0_i32_0 = arith.constant 0 : i32
    %c0_i32_1 = arith.constant 0 : i32
    return %c0_i32, %c0_i32_0 : i32, i32
  }
  func.func @transform_4(%arg0: i32) -> (i32, i32) {
    %c0_i32 = arith.constant 0 : i32
    %c0_i32_0 = arith.constant 0 : i32
    %c0_i32_1 = arith.constant 0 : i32
    return %c0_i32, %c0_i32_0 : i32, i32
  }
  func.func @transform_5(%arg0: i32) -> (i32, i32) {
    %c0_i32 = arith.constant 0 : i32
    %c0_i32_0 = arith.constant 0 : i32
    %c0_i32_1 = arith.constant 0 : i32
    return %c0_i32, %c0_i32_0 : i32, i32
  }
  func.func @transform_6(%arg0: i32) -> (i32, i32) {
    %c0_i32 = arith.constant 0 : i32
    %c0_i32_0 = arith.constant 0 : i32
    %c0_i32_1 = arith.constant 0 : i32
    return %c0_i32, %c0_i32_0 : i32, i32
  }
  func.func @transform_7(%arg0: i32) -> (i32, i32) {
    %c0_i32 = arith.constant 0 : i32
    %c0_i32_0 = arith.constant 0 : i32
    %c0_i32_1 = arith.constant 0 : i32
    return %c0_i32, %c0_i32_0 : i32, i32
  }
  func.func @transform_8(%arg0: i32) -> (i32, i32) {
    %c0_i32 = arith.constant 0 : i32
    %c0_i32_0 = arith.constant 0 : i32
    %c0_i32_1 = arith.constant 0 : i32
    return %c0_i32, %c0_i32_0 : i32, i32
  }
}

</mosaic_0001>

<bundles_post_ra>
// kernel: cheb_network_forward.1
= control target key start
LH: loop header
LB: loop body
LE: loop exit
PB: predicated region body
PF: predicated region fallthrough
CT: control target
= control target key end

     0   :  { %13 = vsyncpa [#allocation6], 0  ;;  %s2326_s0 = inlined_call_operand.hbm [shape: bf16[64,64], index: 0, kind: input, shape index: {}]   ;;  %s2327_s1 = inlined_call_operand.vmem [shape: f32[64,128], index: 1, kind: input, shape index: {}]   ;;  %s2328_s2 = inlined_call_operand.vmem [shape: bf16[384,128], index: 2, kind: input, shape index: {}]   ;;  %s2329_s3 = inlined_call_operand.vmem [shape: f32[1,128], index: 3, kind: input, shape index: {}]   ;;  %s2330_s4 = inlined_call_operand.hbm [shape: bf16[384,128], index: 4, kind: input, shape index: {}]   ;;  %s2331_s5 = inlined_call_operand.vmem [shape: f32[1,128], index: 5, kind: input, shape index: {}]   ;;  %s2332_s6 = inlined_call_operand.hbm [shape: bf16[128,128], index: 6, kind: input, shape index: {}]   ;;  %s2333_s7 = inlined_call_operand.vmem [shape: f32[1,128], index: 7, kind: input, shape index: {}]   ;;  %s2334_s8 = inlined_call_operand.vmem [shape: f32[64,128], index: 8, kind: output, shape index: {}]  }
   0x1   :  { %14 = vsyncpa [#allocation8], 0  ;;  %s1899_s27 = smov [#allocation5]   ;;  %s1827_s9 = scalar_lea.hbm %s2330_s4, 3072 }
   0x2   :  { %s26_s28 = sshll.u32 %s1899_s27, 4  ;;  %p1828_p0 = scmp.ne.s32.totalorder %s2330_s4, %s1827_s9  ;;  %s27_s28 = int_to_ptr.vmem [resolvable:$true] %s26_s28 }
   0x3   :  { %p1831_p1 = scmp.lt.u32.totalorder %s1827_s9, %s2330_s4 }
   0x5   :  { %p1833_p2 = pnand %p1831_p1, %p1828_p0 }
   0x7   :  { %1836 = shalt.err (!%p1833_p2)
}
   0x8   :  { %s1837_s14 = scalar_lea.vmem %s27_s28, 3072  ;;  %p1842_p4 = scmp.lt.s32.totalorder %s27_s28, %s27_s28 }
   0x9   :  { %p1838_p3 = scmp.ne.s32.totalorder %s27_s28, %s1837_s14  ;;  %p1843_p5 = scmp.lt.s32.totalorder %s1837_s14, %s1837_s14 }
   0xb   :  { %p1844_p6 = por %p1843_p5, %p1842_p4 }
   0xd   :  { %p1845_p7 = pnand %p1844_p6, %p1838_p3 }
   0xf   :  { %1848 = shalt.err (!%p1845_p7)
}
  0x10   :  { %s1900_s15 = smov 64   ;;  %s1901_s16 = smov 4  }
  0x11   :  { %32 = dma.hbm_to_vmem [thread:$0]  %s2330_s4, 3072, %s27_s28, [#allocation6], %s1900_s15, %s1900_s15, %s1901_s16  }
  0x12   :  { %s1902_s19 = smov [#allocation7]   ;;  %s1849_s23 = scalar_lea.hbm %s2332_s6, 1024 }
  0x13   :  { %s40_s20 = sshll.u32 %s1902_s19, 4  ;;  %p1850_p8 = scmp.ne.s32.totalorder %s2332_s6, %s1849_s23  ;;  %s41_s20 = int_to_ptr.vmem [resolvable:$true] %s40_s20 }
  0x14   :  { %p1853_p9 = scmp.lt.u32.totalorder %s1849_s23, %s2332_s6 }
  0x16   :  { %p1855_p10 = pnand %p1853_p9, %p1850_p8 }
  0x18   :  { %1858 = shalt.err (!%p1855_p10)
}
  0x19   :  { %s1859_s29 = scalar_lea.vmem %s41_s20, 1024  ;;  %p1864_p12 = scmp.lt.s32.totalorder %s41_s20, %s41_s20 }
  0x1a   :  { %p1860_p11 = scmp.ne.s32.totalorder %s41_s20, %s1859_s29  ;;  %p1865_p13 = scmp.lt.s32.totalorder %s1859_s29, %s1859_s29 }
  0x1c   :  { %p1866_p0 = por %p1865_p13, %p1864_p12 }
  0x1e   :  { %p1867_p1 = pnand %p1866_p0, %p1860_p11 }
  0x20   :  { %1870 = shalt.err (!%p1867_p1)
}
  0x21   :  { %46 = dma.hbm_to_vmem [thread:$0]  %s2332_s6, 1024, %s41_s20, [#allocation8], %s1900_s15, %s1900_s15, %s1901_s16  }
  0x22   :  { %1893 = dma.done.wait [#allocation6], 3072  }
  0x23   :  { %1894 = vsyncadd [#allocation6], 4294964224 }
  0x24   :  { %1895 = dma.done.wait [#allocation8], 1024  }
  0x25   :  { %1896 = vsyncadd [#allocation8], 4294966272  ;;  %s1903_s30 = smov [#allocation2]   ;;  %s1871_s12 = scalar_lea.hbm %s2326_s0, 512 }
  0x26   :  { %s63_s9 = sshll.u32 %s1903_s30, 4  ;;  %p1872_p2 = scmp.ne.s32.totalorder %s2326_s0, %s1871_s12  ;;  %s64_s9 = int_to_ptr.vmem [resolvable:$true] %s63_s9 }
  0x27   :  { %p1875_p3 = scmp.lt.u32.totalorder %s1871_s12, %s2326_s0 }
  0x29   :  { %p1877_p4 = pnand %p1875_p3, %p1872_p2 }
  0x2b   :  { %1880 = shalt.err (!%p1877_p4)  }
  0x2c   :  { %s1881_s6 = scalar_lea.vmem %s64_s9, 512  ;;  %p1886_p6 = scmp.lt.s32.totalorder %s64_s9, %s64_s9 }
  0x2d   :  { %p1882_p5 = scmp.ne.s32.totalorder %s64_s9, %s1881_s6  ;;  %p1887_p7 = scmp.lt.s32.totalorder %s1881_s6, %s1881_s6 }
  0x2f   :  { %p1888_p8 = por %p1887_p7, %p1886_p6 }
  0x31   :  { %p1889_p9 = pnand %p1888_p8, %p1882_p5 }
  0x33   :  { %1892 = shalt.err (!%p1889_p9)  }
  0x34   :  { %66 = dma.hbm_to_vmem [thread:$0]  %s2326_s0, 512, %s64_s9, [#allocation4] }
  0x35   :  { %1897 = dma.done.wait [#allocation4], 512 }
  0x36   :  { %1898 = vsyncadd [#allocation4], 4294966784  ;;  %v1988_v0 = vld [vmem:[%s2327_s1] sm:$0xff]  ;;  %v1993_v1 = vld [vmem:[%s2327_s1 + $0x8] sm:$0xff]  ;;  %vm91_vm0 = vcmask 523264  }
  0x37   :  { %v1998_v2 = vld [vmem:[%s2327_s1 + $0x10] sm:$0xff]  ;;  %v2002_v3 = vpack.c.bf16 %v1993_v1, %v1988_v0  ;;  %v2007_v4 = vld [vmem:[%s2327_s1 + $0x18] sm:$0xff]  ;;  %v2016_v6 = vld [vmem:[%s2327_s1 + $0x20] sm:$0xff] }
  0x38   :  { %v2011_v5 = vpack.c.bf16 %v2007_v4, %v1998_v2  ;;  %v2021_v7 = vld [vmem:[%s2327_s1 + $0x28] sm:$0xff]  ;;  %v2023_v8 = vld [vmem:[#allocation2] sm:$0xff]  ;;  %v2039_v10 = vld [vmem:[%s2327_s1 + $0x30] sm:$0xff] }
  0x39   :  { %1598 = vmatprep.subr.bf16.mxu0 %v2002_v3  ;;  %1606 = vmatprep.mubr.msk.bf16.mxu0 %vm91_vm0, %v2023_v8  ;;  %v2034_v9 = vpack.c.bf16 %v2021_v7, %v2016_v6  ;;  %v2044_v11 = vld [vmem:[%s2327_s1 + $0x38] sm:$0xff]  ;;  %v1739_v13 = vld [vmem:[%s2328_s2 + $0x40] sm:$0xff]   ;;  %v2057_v14 = vld [vmem:[#allocation2 + $0x8] sm:$0xff] }
  0x3a   :  { %1599 = vmatpush3.bf16.msra.mxu0 %v2002_v3  ;;  %1622 = vmatprep.mubr.msk.bf16.mxu1 %vm91_vm0, %v2023_v8  ;;  %v2050_v12 = vpack.c.bf16 %v2044_v11, %v2039_v10  ;;  %v2059_v15 = vld [vmem:[#allocation2 + $0x10] sm:$0xff]  ;;  %v1740_v16 = vld [vmem:[%s2328_s2] sm:$0xff]   ;;  %v1741_v17 = vld [vmem:[%s2328_s2 + $0x48] sm:$0xff]  }
  0x3b   :  { %1600 = vmatprep.subr.bf16.mxu0 %v2011_v5  ;;  %v1742_v18 = vld [vmem:[%s2328_s2 + $0x8] sm:$0xff]   ;;  %v1743_v19 = vld [vmem:[%s2328_s2 + $0x50] sm:$0xff]   ;;  %v2078_v20 = vld [vmem:[#allocation2 + $0x18] sm:$0xff] }
  0x3c   :  { %v1744_v21 = vld [vmem:[%s2328_s2 + $0x10] sm:$0xff]   ;;  %v1745_v22 = vld [vmem:[%s2328_s2 + $0x58] sm:$0xff]   ;;  %v1747_v24 = vld [vmem:[%s2328_s2 + $0x60] sm:$0xff]  }
  0x3d   :  { %v1746_v23 = vld [vmem:[%s2328_s2 + $0x18] sm:$0xff]   ;;  %v1748_v25 = vld [vmem:[%s2328_s2 + $0x20] sm:$0xff]   ;;  %v1749_v26 = vld [vmem:[%s2328_s2 + $0x68] sm:$0xff]  }
  0x3e   :  { %1601 = vmatpush3.bf16.msra.mxu0 %v2011_v5  ;;  %v1750_v27 = vld [vmem:[%s2328_s2 + $0x28] sm:$0xff]   ;;  %v1751_v28 = vld [vmem:[%s2328_s2 + $0x70] sm:$0xff]   ;;  %v1753_v30 = vld [vmem:[%s2328_s2 + $0x78] sm:$0xff]  }
  0x3f   :  { %1602 = vmatprep.subr.bf16.mxu0 %v2034_v9  ;;  %v1752_v29 = vld [vmem:[%s2328_s2 + $0x30] sm:$0xff]   ;;  %v1754_v31 = vld [vmem:[%s2328_s2 + $0x38] sm:$0xff]   ;;  %v1755_v44 = vld [vmem:[%s2328_s2 + $0x80] sm:$0xff]  }
  0x40   :  { %v1756_v45 = vld [vmem:[%s2328_s2 + $0x88] sm:$0xff]   ;;  %v1757_v46 = vld [vmem:[%s2328_s2 + $0x90] sm:$0xff]   ;;  %v1758_v47 = vld [vmem:[%s2328_s2 + $0x98] sm:$0xff]  }
  0x41   :  { %v1759_v48 = vld [vmem:[%s2328_s2 + $0xa0] sm:$0xff]   ;;  %v1760_v49 = vld [vmem:[%s2328_s2 + $0xa8] sm:$0xff]   ;;  %v1761_v50 = vld [vmem:[%s2328_s2 + $0xb0] sm:$0xff]  }
  0x42   :  { %1603 = vmatpush3.bf16.msra.mxu0 %v2034_v9  ;;  %v1762_v51 = vld [vmem:[%s2328_s2 + $0xb8] sm:$0xff]  }
  0x43   :  { %1604 = vmatprep.subr.bf16.mxu0 %v2050_v12 }
  0x46   :  { %1605 = vmatpush3.bf16.msra.mxu0 %v2050_v12 }
  0x47   :  { %1466 = vmatprep.subr.bf16.mxu0 %v1739_v13 }
  0x49   :  { %1607 = vmatmul.mubr.msk.bf16.vlgmr.msra.gmra.mrb[0].mxu0 %vm91_vm0, %v2057_v14 }
  0x4a   :  { %1610 = vmatprep.mubr.msk.bf16.mxu0 %vm91_vm0, %v2059_v15  ;;  %1467 = vmatpush3.bf16.msra.mxu0 %v1740_v16 }
  0x4b   :  { %1468 = vmatprep.subr.bf16.mxu0 %v1741_v17 }
  0x4e   :  { %1469 = vmatpush3.bf16.msra.mxu0 %v1742_v18 }
  0x4f   :  { %1470 = vmatprep.subr.bf16.mxu0 %v1743_v19 }
  0x51   :  { %1611 = vmatmul.mubr.msk.bf16.gmra.mrb[4].mxu0 %vm91_vm0, %v2078_v20 }
  0x52   :  { %1471 = vmatpush3.bf16.msra.mxu0 %v1744_v21 }
  0x53   :  { %1472 = vmatprep.subr.bf16.mxu0 %v1745_v22 }
  0x56   :  { %1473 = vmatpush3.bf16.msra.mxu0 %v1746_v23 }
  0x57   :  { %1474 = vmatprep.subr.bf16.mxu0 %v1747_v24 }
  0x5a   :  { %1475 = vmatpush3.bf16.msra.mxu0 %v1748_v25 }
  0x5b   :  { %1476 = vmatprep.subr.bf16.mxu0 %v1749_v26 }
  0x5e   :  { %1477 = vmatpush3.bf16.msra.mxu0 %v1750_v27 }
  0x5f   :  { %1478 = vmatprep.subr.bf16.mxu0 %v1751_v28 }
  0x62   :  { %1479 = vmatpush3.bf16.msra.mxu0 %v1752_v29 }
  0x63   :  { %1480 = vmatprep.subr.bf16.mxu0 %v1753_v30 }
  0x66   :  { %1481 = vmatpush3.bf16.msra.mxu0 %v1754_v31 }
 0x11c   :  { %v1608_v32 = vpop.f32.mrb[0].mxu0 }
 0x11d   :  { %v138_v33 = vpop.f32.mrb[1].mxu0 }
 0x11e   :  { %v1609_v34 = vpop.f32.mrb[2].mxu0 }
 0x11f   :  { %v170_v35 = vpack.c.bf16 %v1609_v34, %v1608_v32  ;;  %v141_v36 = vpop.f32.mrb[3].mxu0 }
 0x120   :  { %v169_v37 = vpack.c.bf16 %v141_v36, %v138_v33 }
 0x122   :  { %1614 = vmatprep.subr.bf16.mxu1 %v169_v37  ;;  %509 = vmatprep.mubr.bf16.mxu0 %v169_v37 }
 0x123   :  { %1615 = vmatpush3.bf16.msra.mxu1 %v169_v37  ;;  %510 = vmatmul.mubr.bf16.vlgmr.msra.gmra.mrb[8].mxu0 %v2002_v3 }
 0x124   :  { %v1612_v38 = vpop.f32.mrb[4].mxu0  ;;  %1616 = vmatprep.subr.bf16.mxu1 %v170_v35  ;;  %517 = vmatprep.mubr.bf16.mxu0 %v170_v35 }
 0x125   :  { %v154_v39 = vpop.f32.mrb[5].mxu0 }
 0x126   :  { %v1613_v40 = vpop.f32.mrb[6].mxu0 }
 0x127   :  { %v172_v41 = vpack.c.bf16 %v1613_v40, %v1612_v38  ;;  %v157_v42 = vpop.f32.mrb[7].mxu0  ;;  %1617 = vmatpush3.bf16.msra.mxu1 %v170_v35 }
 0x128   :  { %v171_v43 = vpack.c.bf16 %v157_v42, %v154_v39 }
 0x12a   :  { %1618 = vmatprep.subr.bf16.mxu1 %v171_v43 }
 0x12b   :  { %1619 = vmatpush3.bf16.msra.mxu1 %v171_v43  ;;  %518 = vmatmul.mubr.bf16.gmra.mrb[12].mxu0 %v2011_v5 }
 0x12c   :  { %1620 = vmatprep.subr.bf16.mxu1 %v172_v41  ;;  %525 = vmatprep.mubr.bf16.mxu0 %v171_v43 }
 0x12f   :  { %1621 = vmatpush3.bf16.msra.mxu1 %v172_v41 }
 0x130   :  { %1630 = vmatprep.subr.bf16.mxu1 %v1755_v44 }
 0x132   :  { %1623 = vmatmul.mubr.msk.bf16.vlgmr.msra.gmra.mrb[0].mxu1 %vm91_vm0, %v2057_v14 }
 0x133   :  { %526 = vmatmul.mubr.bf16.gmra.mrb[16].mxu0 %v2034_v9  ;;  %1626 = vmatprep.mubr.msk.bf16.mxu1 %vm91_vm0, %v2059_v15 }
 0x134   :  { %533 = vmatprep.mubr.bf16.mxu0 %v172_v41  ;;  %1631 = vmatpush3.bf16.msra.mxu1 %v1755_v44 }
 0x135   :  { %1632 = vmatprep.subr.bf16.mxu1 %v1756_v45 }
 0x138   :  { %1633 = vmatpush3.bf16.msra.mxu1 %v1756_v45 }
 0x139   :  { %1634 = vmatprep.subr.bf16.mxu1 %v1757_v46 }
 0x13a   :  { %1627 = vmatmul.mubr.msk.bf16.gmra.mrb[4].mxu1 %vm91_vm0, %v2078_v20 }
 0x13b   :  { %534 = vmatmul.mubr.bf16.gmra.mrb[20].mxu0 %v2050_v12 }
 0x13c   :  { %1635 = vmatpush3.bf16.msra.mxu1 %v1757_v46  ;;  %1678 = vmatprep.mubr.msk.bf16.mxu0 %vm91_vm0, %v2023_v8 }
 0x13d   :  { %1636 = vmatprep.subr.bf16.mxu1 %v1758_v47 }
 0x140   :  { %1637 = vmatpush3.bf16.msra.mxu1 %v1758_v47 }
 0x141   :  { %1638 = vmatprep.subr.bf16.mxu1 %v1759_v48 }
 0x144   :  { %1639 = vmatpush3.bf16.msra.mxu1 %v1759_v48 }
 0x145   :  { %1640 = vmatprep.subr.bf16.mxu1 %v1760_v49 }
 0x148   :  { %1641 = vmatpush3.bf16.msra.mxu1 %v1760_v49 }
 0x149   :  { %1642 = vmatprep.subr.bf16.mxu1 %v1761_v50 }
 0x14c   :  { %1643 = vmatpush3.bf16.msra.mxu1 %v1761_v50 }
 0x14d   :  { %1644 = vmatprep.subr.bf16.mxu1 %v1762_v51 }
 0x150   :  { %1645 = vmatpush3.bf16.msra.mxu1 %v1762_v51 }
 0x1f6   :  { %v1482_v52 = vpop.f32.mrb[8].mxu0 }
 0x1f7   :  { %v1483_v53 = vpop.f32.mrb[9].mxu0 }
 0x1f8   :  { %v1484_v54 = vadd.f32 %v1483_v53, %v1482_v52  ;;  %v1485_v55 = vpop.f32.mrb[10].mxu0 }
 0x1f9   :  { %v1486_v56 = vpop.f32.mrb[11].mxu0 }
 0x1fa   :  { %v1487_v57 = vadd.f32 %v1486_v56, %v1485_v55 }
 0x1fe   :  { %v1488_v58 = vpop.f32.mrb[12].mxu0 }
 0x1ff   :  { %v1489_v59 = vpop.f32.mrb[13].mxu0 }
 0x200   :  { %v1490_v60 = vadd.f32 %v1489_v59, %v1488_v58  ;;  %v1491_v61 = vpop.f32.mrb[14].mxu0 }
 0x201   :  { %v1492_v62 = vpop.f32.mrb[15].mxu0 }
 0x202   :  { %v1493_v63 = vadd.f32 %v1492_v62, %v1491_v61 }
 0x205   :  { %v1624_v3 = vpop.f32.mrb[0].mxu1 }
 0x206   :  { %v244_v5 = vmul.f32 2.0, %v1624_v3  ;;  %v211_v9 = vpop.f32.mrb[1].mxu1  ;;  %v1494_v12 = vpop.f32.mrb[16].mxu0 }
 0x207   :  { %v242_v13 = vmul.f32 2.0, %v211_v9  ;;  %v1625_v16 = vpop.f32.mrb[2].mxu1  ;;  %v1495_v17 = vpop.f32.mrb[17].mxu0 }
 0x208   :  { %v245_v18 = vmul.f32 2.0, %v1625_v16  ;;  %v214_v19 = vpop.f32.mrb[3].mxu1  ;;  %v1496_v21 = vadd.f32 %v1495_v17, %v1494_v12  ;;  %v1497_v22 = vpop.f32.mrb[18].mxu0  ;;  %v252_v25 = vsub.f32 %v244_v5, %v1998_v2 }
 0x209   :  { %v243_v23 = vmul.f32 2.0, %v214_v19  ;;  %v1498_v24 = vpop.f32.mrb[19].mxu0  ;;  %v250_v28 = vsub.f32 %v242_v13, %v1988_v0 }
 0x20a   :  { %v253_v26 = vsub.f32 %v245_v18, %v2007_v4  ;;  %v1499_v27 = vadd.f32 %v1498_v24, %v1497_v22 }
 0x20b   :  { %v251_v29 = vsub.f32 %v243_v23, %v1993_v1 }
 0x20c   :  { %v259_v30 = vpack.c.bf16 %v253_v26, %v252_v25 }
 0x20d   :  { %v1628_v31 = vpop.f32.mrb[4].mxu1  ;;  %v258_v32 = vpack.c.bf16 %v251_v29, %v250_v28  ;;  %v1763_v28 = vld [vmem:[#allocation5 + $0x40] sm:$0xff]  }
 0x20e   :  { %v248_v33 = vmul.f32 2.0, %v1628_v31  ;;  %v227_v34 = vpop.f32.mrb[5].mxu1  ;;  %v1500_v42 = vpop.f32.mrb[20].mxu0  ;;  %v1764_v29 = vld [vmem:[#allocation5] sm:$0xff]   ;;  %v1766_v31 = vld [vmem:[#allocation5 + $0x8] sm:$0xff]  }
 0x20f   :  { %v246_v35 = vmul.f32 2.0, %v227_v34  ;;  %v1629_v36 = vpop.f32.mrb[6].mxu1  ;;  %1646 = vmatprep.mubr.bf16.mxu1 %v258_v32  ;;  %v1501_v43 = vpop.f32.mrb[21].mxu0  ;;  %v1767_v32 = vld [vmem:[#allocation5 + $0x50] sm:$0xff]   ;;  %v1769_v34 = vld [vmem:[#allocation5 + $0x58] sm:$0xff]  }
 0x210   :  { %v249_v37 = vmul.f32 2.0, %v1629_v36  ;;  %v230_v38 = vpop.f32.mrb[7].mxu1  ;;  %1647 = vmatmul.mubr.bf16.vlgmr.msra.gmra.mrb[8].mxu1 %v259_v30  ;;  %v256_v2 = vsub.f32 %v248_v33, %v2039_v10  ;;  %v1502_v44 = vadd.f32 %v1501_v43, %v1500_v42  ;;  %v1503_v45 = vpop.f32.mrb[22].mxu0  ;;  %v1382_v10 = vld [vmem:[%s2329_s3] ss:$0 sm:$0xff]  ;;  %v1765_v30 = vld [vmem:[#allocation5 + $0x48] sm:$0xff]  }
 0x211   :  { %v247_v39 = vmul.f32 2.0, %v230_v38  ;;  %v254_v0 = vsub.f32 %v246_v35, %v2016_v6  ;;  %v1504_v46 = vpop.f32.mrb[23].mxu0  ;;  %v520_v6 = vadd.f32 %v1490_v60, %v1382_v10  ;;  %v523_v50 = vadd.f32 %v1493_v63, %v1382_v10  ;;  %v1768_v33 = vld [vmem:[#allocation5 + $0x10] sm:$0xff]   ;;  %v1770_v35 = vld [vmem:[#allocation5 + $0x18] sm:$0xff]   ;;  %v1771_v36 = vld [vmem:[#allocation5 + $0x60] sm:$0xff]  }
 0x212   :  { %v257_v4 = vsub.f32 %v249_v37, %v2044_v11  ;;  %v1505_v47 = vadd.f32 %v1504_v46, %v1503_v45  ;;  %v515_v52 = vadd.f32 %v1487_v57, %v1382_v10  ;;  %v536_v58 = vadd.f32 %v1502_v44, %v1382_v10  ;;  %v1772_v37 = vld [vmem:[#allocation5 + $0x20] sm:$0xff]   ;;  %v1773_v38 = vld [vmem:[#allocation5 + $0x68] sm:$0xff]  }
 0x213   :  { %v255_v1 = vsub.f32 %v247_v39, %v2021_v7  ;;  %v512_v7 = vadd.f32 %v1484_v54, %v1382_v10  ;;  %v528_v3 = vadd.f32 %v1496_v21, %v1382_v10  ;;  %v531_v17 = vadd.f32 %v1499_v27, %v1382_v10  ;;  %v1774_v39 = vld [vmem:[#allocation5 + $0x28] sm:$0xff]  }
 0x214   :  { %v261_v40 = vpack.c.bf16 %v257_v4, %v256_v2  ;;  %v539_v61 = vadd.f32 %v1505_v47, %v1382_v10  ;;  %v1775_v2 = vld [vmem:[#allocation5 + $0x70] sm:$0xff]  }
 0x215   :  { %v260_v41 = vpack.c.bf16 %v255_v1, %v254_v0  ;;  %v1776_v4 = vld [vmem:[#allocation5 + $0x30] sm:$0xff]   ;;  %v1777_v0 = vld [vmem:[#allocation5 + $0x78] sm:$0xff]  }
 0x216   :  { %v1778_v1 = vld [vmem:[#allocation5 + $0x38] sm:$0xff]  }
 0x217   :  { %1650 = vmatprep.mubr.bf16.mxu1 %v260_v41 }
 0x218   :  { %1651 = vmatmul.mubr.bf16.gmra.mrb[12].mxu1 %v261_v40 }
 0x219   :  { %1662 = vmatprep.mubr.msk.bf16.mxu1 %vm91_vm0, %v2023_v8 }
 0x2e3   :  { %v1648_v11 = vpop.f32.mrb[8].mxu1 }
 0x2e4   :  { %v2164_v48 = vadd.f32 %v1648_v11, %v520_v6  ;;  %v576_v49 = vpop.f32.mrb[9].mxu1 }
 0x2e5   :  { %v2166_v51 = vadd.f32 %v576_v49, %v512_v7  ;;  %v1649_v8 = vpop.f32.mrb[10].mxu1  ;;  %v1779_v49 = vld [vmem:[#allocation5 + $0x80] sm:$0xff]  }
 0x2e6   :  { %v2168_v53 = vadd.f32 %v1649_v8, %v523_v50  ;;  %v579_v55 = vpop.f32.mrb[11].mxu1  ;;  %v609_v62 = vmax.f32 %v2164_v48, 0.0  ;;  %v1780_v50 = vld [vmem:[#allocation5 + $0x88] sm:$0xff]   ;;  %v1781_v8 = vld [vmem:[#allocation5 + $0x90] sm:$0xff]  }
 0x2e7   :  { %v2170_v56 = vadd.f32 %v579_v55, %v515_v52  ;;  %v607_v59 = vmax.f32 %v2166_v51, 0.0  ;;  %v1782_v52 = vld [vmem:[#allocation5 + $0x98] sm:$0xff]   ;;  %v1784_v55 = vld [vmem:[#allocation5 + $0xa8] sm:$0xff]  }
 0x2e8   :  { %v610_v60 = vmax.f32 %v2168_v53, 0.0 }
 0x2e9   :  { %v608_v54 = vmax.f32 %v2170_v56, 0.0 }
 0x2ea   :  { %v2188_v12 = vpack.c.bf16 %v610_v60, %v609_v62 }
 0x2eb   :  { %v2180_v57 = vpack.c.bf16 %v608_v54, %v607_v59  ;;  %v1652_v63 = vpop.f32.mrb[12].mxu1 }
 0x2ec   :  { %v2182_v5 = vadd.f32 %v1652_v63, %v536_v58  ;;  %v592_v9 = vpop.f32.mrb[13].mxu1  ;;  %v1786_v58 = vld [vmem:[#allocation5 + $0xb8] sm:$0xff]  }
 0x2ed   :  { %v2190_v13 = vadd.f32 %v592_v9, %v528_v3  ;;  %v1653_v16 = vpop.f32.mrb[14].mxu1  ;;  %1654 = vmatprep.subr.bf16.mxu1 %v2180_v57  ;;  %v1790_v63 = vld [vmem:[#allocation7 + $0x18] sm:$0xff]   ;;  %v1791_v3 = vld [vmem:[#allocation7 + $0x20] sm:$0xff]   ;;  %v1792_v9 = vld [vmem:[#allocation7 + $0x28] sm:$0xff]  }
 0x2ee   :  { %v2193_v18 = vadd.f32 %v1653_v16, %v539_v61  ;;  %v595_v19 = vpop.f32.mrb[15].mxu1  ;;  %1655 = vmatpush3.bf16.msra.mxu1 %v2180_v57  ;;  %v613_v25 = vmax.f32 %v2182_v5, 0.0  ;;  %v1788_v61 = vld [vmem:[#allocation7 + $0x8] sm:$0xff]   ;;  %v1415_v5 = vld [vmem:[%s2331_s5] ss:$0 sm:$0xff] }
 0x2ef   :  { %v2196_v21 = vadd.f32 %v595_v19, %v531_v17  ;;  %1656 = vmatprep.subr.bf16.mxu1 %v2188_v12  ;;  %v611_v22 = vmax.f32 %v2190_v13, 0.0 }
 0x2f0   :  { %v614_v23 = vmax.f32 %v2193_v18, 0.0 }
 0x2f1   :  { %v612_v24 = vmax.f32 %v2196_v21, 0.0 }
 0x2f2   :  { %1657 = vmatpush3.bf16.msra.mxu1 %v2188_v12  ;;  %v2214_v27 = vpack.c.bf16 %v614_v23, %v613_v25 }
 0x2f3   :  { %v2208_v26 = vpack.c.bf16 %v612_v24, %v611_v22 }
 0x2f5   :  { %1658 = vmatprep.subr.bf16.mxu1 %v2208_v26 }
 0x2f6   :  { %1659 = vmatpush3.bf16.msra.mxu1 %v2208_v26 }
 0x2f7   :  { %1660 = vmatprep.subr.bf16.mxu1 %v2214_v27 }
 0x2fa   :  { %1661 = vmatpush3.bf16.msra.mxu1 %v2214_v27 }
 0x2fb   :  { %1534 = vmatprep.subr.bf16.mxu1 %v1763_v28 }
 0x2fd   :  { %1663 = vmatmul.mubr.msk.bf16.vlgmr.msra.gmra.mrb[16].mxu1 %vm91_vm0, %v2057_v14 }
 0x2fe   :  { %1666 = vmatprep.mubr.msk.bf16.mxu1 %vm91_vm0, %v2059_v15  ;;  %1535 = vmatpush3.bf16.msra.mxu1 %v1764_v29 }
 0x2ff   :  { %1536 = vmatprep.subr.bf16.mxu1 %v1765_v30 }
 0x302   :  { %1537 = vmatpush3.bf16.msra.mxu1 %v1766_v31 }
 0x303   :  { %1538 = vmatprep.subr.bf16.mxu1 %v1767_v32 }
 0x305   :  { %1667 = vmatmul.mubr.msk.bf16.gmra.mrb[20].mxu1 %vm91_vm0, %v2078_v20 }
 0x306   :  { %1539 = vmatpush3.bf16.msra.mxu1 %v1768_v33 }
 0x307   :  { %1540 = vmatprep.subr.bf16.mxu1 %v1769_v34 }
 0x30a   :  { %1541 = vmatpush3.bf16.msra.mxu1 %v1770_v35 }
 0x30b   :  { %1542 = vmatprep.subr.bf16.mxu1 %v1771_v36 }
 0x30e   :  { %1543 = vmatpush3.bf16.msra.mxu1 %v1772_v37 }
 0x30f   :  { %1544 = vmatprep.subr.bf16.mxu1 %v1773_v38 }
 0x312   :  { %1545 = vmatpush3.bf16.msra.mxu1 %v1774_v39 }
 0x313   :  { %1546 = vmatprep.subr.bf16.mxu1 %v1775_v2 }
 0x316   :  { %1547 = vmatpush3.bf16.msra.mxu1 %v1776_v4 }
 0x317   :  { %1548 = vmatprep.subr.bf16.mxu1 %v1777_v0 }
 0x31a   :  { %1549 = vmatpush3.bf16.msra.mxu1 %v1778_v1 }
 0x3d0   :  { %v1664_v40 = vpop.f32.mrb[16].mxu1 }
 0x3d1   :  { %v657_v41 = vpop.f32.mrb[17].mxu1 }
 0x3d2   :  { %v1665_v42 = vpop.f32.mrb[18].mxu1 }
 0x3d3   :  { %v689_v43 = vpack.c.bf16 %v1665_v42, %v1664_v40  ;;  %v660_v44 = vpop.f32.mrb[19].mxu1 }
 0x3d4   :  { %v688_v45 = vpack.c.bf16 %v660_v44, %v657_v41 }
 0x3d6   :  { %1670 = vmatprep.subr.bf16.mxu0 %v688_v45  ;;  %1028 = vmatprep.mubr.bf16.mxu1 %v688_v45 }
 0x3d7   :  { %1671 = vmatpush3.bf16.msra.mxu0 %v688_v45  ;;  %1029 = vmatmul.mubr.bf16.vlgmr.msra.gmra.mrb[24].mxu1 %v2180_v57  ;;  %v1789_v57 = vld [vmem:[#allocation7 + $0x10] sm:$0xff]  }
 0x3d8   :  { %v1668_v46 = vpop.f32.mrb[20].mxu1  ;;  %1672 = vmatprep.subr.bf16.mxu0 %v689_v43  ;;  %1036 = vmatprep.mubr.bf16.mxu1 %v689_v43 }
 0x3d9   :  { %v673_v47 = vpop.f32.mrb[21].mxu1 }
 0x3da   :  { %v1669_v10 = vpop.f32.mrb[22].mxu1 }
 0x3db   :  { %v691_v6 = vpack.c.bf16 %v1669_v10, %v1668_v46  ;;  %v676_v11 = vpop.f32.mrb[23].mxu1  ;;  %1673 = vmatpush3.bf16.msra.mxu0 %v689_v43 }
 0x3dc   :  { %v690_v7 = vpack.c.bf16 %v676_v11, %v673_v47 }
 0x3de   :  { %1674 = vmatprep.subr.bf16.mxu0 %v690_v7 }
 0x3df   :  { %1675 = vmatpush3.bf16.msra.mxu0 %v690_v7  ;;  %1037 = vmatmul.mubr.bf16.gmra.mrb[28].mxu1 %v2188_v12 }
 0x3e0   :  { %1676 = vmatprep.subr.bf16.mxu0 %v691_v6  ;;  %1044 = vmatprep.mubr.bf16.mxu1 %v690_v7 }
 0x3e3   :  { %1677 = vmatpush3.bf16.msra.mxu0 %v691_v6 }
 0x3e4   :  { %1686 = vmatprep.subr.bf16.mxu0 %v1779_v49 }
 0x3e6   :  { %1679 = vmatmul.mubr.msk.bf16.vlgmr.msra.gmra.mrb[24].mxu0 %vm91_vm0, %v2057_v14  ;;  %v1783_v14 = vld [vmem:[#allocation5 + $0xa0] sm:$0xff]  }
 0x3e7   :  { %1045 = vmatmul.mubr.bf16.gmra.mrb[32].mxu1 %v2208_v26  ;;  %1682 = vmatprep.mubr.msk.bf16.mxu0 %vm91_vm0, %v2059_v15  ;;  %v1785_v15 = vld [vmem:[#allocation5 + $0xb0] sm:$0xff]  }
 0x3e8   :  { %1052 = vmatprep.mubr.bf16.mxu1 %v691_v6  ;;  %1687 = vmatpush3.bf16.msra.mxu0 %v1779_v49 }
 0x3e9   :  { %1688 = vmatprep.subr.bf16.mxu0 %v1780_v50 }
 0x3ec   :  { %1689 = vmatpush3.bf16.msra.mxu0 %v1780_v50 }
 0x3ed   :  { %1690 = vmatprep.subr.bf16.mxu0 %v1781_v8 }
 0x3ee   :  { %1683 = vmatmul.mubr.msk.bf16.gmra.mrb[28].mxu0 %vm91_vm0, %v2078_v20  ;;  %v1787_v20 = vld [vmem:[#allocation7] sm:$0xff]  }
 0x3ef   :  { %1053 = vmatmul.mubr.bf16.gmra.mrb[36].mxu1 %v2214_v27  ;;  %1710 = vmatprep.subr.bf16.mxu1 %v1787_v20 }
 0x3f0   :  { %1691 = vmatpush3.bf16.msra.mxu0 %v1781_v8  ;;  %1711 = vmatpush3.bf16.msra.mxu1 %v1787_v20 }
 0x3f1   :  { %1692 = vmatprep.subr.bf16.mxu0 %v1782_v52  ;;  %1712 = vmatprep.subr.bf16.mxu1 %v1788_v61 }
 0x3f4   :  { %1693 = vmatpush3.bf16.msra.mxu0 %v1782_v52  ;;  %1713 = vmatpush3.bf16.msra.mxu1 %v1788_v61 }
 0x3f5   :  { %1694 = vmatprep.subr.bf16.mxu0 %v1783_v14  ;;  %1714 = vmatprep.subr.bf16.mxu1 %v1789_v57 }
 0x3f8   :  { %1695 = vmatpush3.bf16.msra.mxu0 %v1783_v14  ;;  %1715 = vmatpush3.bf16.msra.mxu1 %v1789_v57  ;;  %v1793_v57 = vld [vmem:[#allocation7 + $0x30] sm:$0xff]  }
 0x3f9   :  { %1696 = vmatprep.subr.bf16.mxu0 %v1784_v55  ;;  %1716 = vmatprep.subr.bf16.mxu1 %v1790_v63 }
 0x3fc   :  { %1697 = vmatpush3.bf16.msra.mxu0 %v1784_v55  ;;  %1717 = vmatpush3.bf16.msra.mxu1 %v1790_v63  ;;  %v1794_v63 = vld [vmem:[#allocation7 + $0x38] sm:$0xff]  }
 0x3fd   :  { %1698 = vmatprep.subr.bf16.mxu0 %v1785_v15  ;;  %1718 = vmatprep.subr.bf16.mxu1 %v1791_v3 }
 0x400   :  { %1699 = vmatpush3.bf16.msra.mxu0 %v1785_v15  ;;  %1719 = vmatpush3.bf16.msra.mxu1 %v1791_v3 }
 0x401   :  { %1700 = vmatprep.subr.bf16.mxu0 %v1786_v58  ;;  %1720 = vmatprep.subr.bf16.mxu1 %v1792_v9 }
 0x404   :  { %1701 = vmatpush3.bf16.msra.mxu0 %v1786_v58  ;;  %1721 = vmatpush3.bf16.msra.mxu1 %v1792_v9 }
 0x405   :  { %1722 = vmatprep.subr.bf16.mxu1 %v1793_v57 }
 0x408   :  { %1723 = vmatpush3.bf16.msra.mxu1 %v1793_v57 }
 0x409   :  { %1724 = vmatprep.subr.bf16.mxu1 %v1794_v63 }
 0x40c   :  { %1725 = vmatpush3.bf16.msra.mxu1 %v1794_v63 }
 0x4aa   :  { %v1550_v12 = vpop.f32.mrb[24].mxu1 }
 0x4ab   :  { %v1551_v16 = vpop.f32.mrb[25].mxu1 }
 0x4ac   :  { %v2236_v17 = vadd.f32 %v1551_v16, %v1550_v12  ;;  %v1553_v19 = vpop.f32.mrb[26].mxu1 }
 0x4ad   :  { %v1554_v26 = vpop.f32.mrb[27].mxu1 }
 0x4ae   :  { %v2238_v27 = vadd.f32 %v1554_v26, %v1553_v19 }
 0x4b0   :  { %v1034_v9 = vadd.f32 %v2238_v27, %v1415_v5 }
 0x4b2   :  { %v1556_v28 = vpop.f32.mrb[28].mxu1 }
 0x4b3   :  { %v1557_v29 = vpop.f32.mrb[29].mxu1 }
 0x4b4   :  { %v1558_v30 = vadd.f32 %v1557_v29, %v1556_v28  ;;  %v1559_v31 = vpop.f32.mrb[30].mxu1 }
 0x4b5   :  { %v1560_v32 = vpop.f32.mrb[31].mxu1 }
 0x4b6   :  { %v1561_v33 = vadd.f32 %v1560_v32, %v1559_v31  ;;  %v1039_v18 = vadd.f32 %v1558_v30, %v1415_v5 }
 0x4b9   :  { %v1680_v34 = vpop.f32.mrb[24].mxu0 }
 0x4ba   :  { %v763_v35 = vmul.f32 2.0, %v1680_v34  ;;  %v730_v36 = vpop.f32.mrb[25].mxu0  ;;  %v1562_v37 = vpop.f32.mrb[32].mxu1 }
 0x4bb   :  { %v761_v38 = vmul.f32 2.0, %v730_v36  ;;  %v1681_v39 = vpop.f32.mrb[26].mxu0  ;;  %v1563_v2 = vpop.f32.mrb[33].mxu1 }
 0x4bc   :  { %v764_v4 = vmul.f32 2.0, %v1681_v39  ;;  %v2240_v0 = vadd.f32 %v1563_v2, %v1562_v37  ;;  %v733_v1 = vpop.f32.mrb[27].mxu0  ;;  %v1565_v40 = vpop.f32.mrb[34].mxu1  ;;  %v771_v43 = vsub.f32 %v763_v35, %v609_v62 }
 0x4bd   :  { %v762_v41 = vmul.f32 2.0, %v733_v1  ;;  %v1566_v42 = vpop.f32.mrb[35].mxu1  ;;  %v769_v46 = vsub.f32 %v761_v38, %v607_v59 }
 0x4be   :  { %v772_v44 = vsub.f32 %v764_v4, %v610_v60  ;;  %v2246_v45 = vadd.f32 %v1566_v42, %v1565_v40 }
 0x4bf   :  { %v770_v47 = vsub.f32 %v762_v41, %v608_v54 }
 0x4c0   :  { %v778_v10 = vpack.c.bf16 %v772_v44, %v771_v43  ;;  %v1050_v27 = vadd.f32 %v2246_v45, %v1415_v5 }
 0x4c1   :  { %v1684_v6 = vpop.f32.mrb[28].mxu0  ;;  %v777_v11 = vpack.c.bf16 %v770_v47, %v769_v46 }
 0x4c2   :  { %v767_v7 = vmul.f32 2.0, %v1684_v6  ;;  %v746_v49 = vpop.f32.mrb[29].mxu0  ;;  %v1568_v50 = vpop.f32.mrb[36].mxu1 }
 0x4c3   :  { %v765_v8 = vmul.f32 2.0, %v746_v49  ;;  %v1685_v48 = vpop.f32.mrb[30].mxu0  ;;  %v1569_v62 = vpop.f32.mrb[37].mxu1  ;;  %1702 = vmatprep.mubr.bf16.mxu0 %v777_v11 }
 0x4c4   :  { %v768_v53 = vmul.f32 2.0, %v1685_v48  ;;  %v1570_v60 = vadd.f32 %v1569_v62, %v1568_v50  ;;  %v749_v52 = vpop.f32.mrb[31].mxu0  ;;  %v1571_v14 = vpop.f32.mrb[38].mxu1  ;;  %1703 = vmatmul.mubr.bf16.vlgmr.msra.gmra.mrb[32].mxu0 %v778_v10  ;;  %v775_v56 = vsub.f32 %v767_v7, %v613_v25 }
 0x4c5   :  { %v766_v51 = vmul.f32 2.0, %v749_v52  ;;  %v1572_v59 = vpop.f32.mrb[39].mxu1  ;;  %v773_v15 = vsub.f32 %v765_v8, %v611_v22  ;;  %v1031_v22 = vadd.f32 %v2236_v17, %v1415_v5  ;;  %v1047_v17 = vadd.f32 %v2240_v0, %v1415_v5  ;;  %v1440_v0 = vld [vmem:[%s2333_s7] ss:$0 sm:$0xff] }
 0x4c6   :  { %v776_v54 = vsub.f32 %v768_v53, %v614_v23  ;;  %v1573_v55 = vadd.f32 %v1572_v59, %v1571_v14  ;;  %v1055_v34 = vadd.f32 %v1570_v60, %v1415_v5 }
 0x4c7   :  { %v774_v58 = vsub.f32 %v766_v51, %v612_v24  ;;  %v1042_v24 = vadd.f32 %v1561_v33, %v1415_v5 }
 0x4c8   :  { %v780_v20 = vpack.c.bf16 %v776_v54, %v775_v56  ;;  %v1058_v33 = vadd.f32 %v1573_v55, %v1415_v5 }
 0x4c9   :  { %v779_v61 = vpack.c.bf16 %v774_v58, %v773_v15 }
 0x4cb   :  { %1706 = vmatprep.mubr.bf16.mxu0 %v779_v61 }
 0x4cc   :  { %1707 = vmatmul.mubr.bf16.gmra.mrb[36].mxu0 %v780_v20 }
 0x597   :  { %v1704_v13 = vpop.f32.mrb[32].mxu0 }
 0x598   :  { %v1104_v21 = vadd.f32 %v1704_v13, %v1039_v18  ;;  %v1095_v23 = vpop.f32.mrb[33].mxu0 }
 0x599   :  { %v1096_v25 = vadd.f32 %v1095_v23, %v1031_v22  ;;  %v1705_v3 = vpop.f32.mrb[34].mxu0 }
 0x59a   :  { %v1107_v12 = vadd.f32 %v1705_v3, %v1042_v24  ;;  %v1098_v16 = vpop.f32.mrb[35].mxu0  ;;  %v1128_v26 = vmax.f32 %v1104_v21, 0.0 }
 0x59b   :  { %v1099_v19 = vadd.f32 %v1098_v16, %v1034_v9  ;;  %v1126_v29 = vmax.f32 %v1096_v25, 0.0 }
 0x59c   :  { %v1129_v28 = vmax.f32 %v1107_v12, 0.0 }
 0x59d   :  { %v1127_v31 = vmax.f32 %v1099_v19, 0.0 }
 0x59e   :  { %v1135_v32 = vpack.c.bf16 %v1129_v28, %v1128_v26 }
 0x59f   :  { %v1134_v30 = vpack.c.bf16 %v1127_v31, %v1126_v29  ;;  %v1708_v35 = vpop.f32.mrb[36].mxu0 }
 0x5a0   :  { %v1120_v36 = vadd.f32 %v1708_v35, %v1055_v34  ;;  %v1111_v37 = vpop.f32.mrb[37].mxu0 }
 0x5a1   :  { %v1112_v38 = vadd.f32 %v1111_v37, %v1047_v17  ;;  %v1709_v39 = vpop.f32.mrb[38].mxu0  ;;  %1726 = vmatprep.mubr.bf16.mxu1 %v1134_v30 }
 0x5a2   :  { %v1123_v2 = vadd.f32 %v1709_v39, %v1058_v33  ;;  %v1114_v4 = vpop.f32.mrb[39].mxu0  ;;  %1727 = vmatmul.mubr.bf16.vlgmr.msra.gmra.mrb[40].mxu1 %v1135_v32  ;;  %v1132_v40 = vmax.f32 %v1120_v36, 0.0 }
 0x5a3   :  { %v1115_v1 = vadd.f32 %v1114_v4, %v1050_v27  ;;  %v1130_v42 = vmax.f32 %v1112_v38, 0.0 }
 0x5a4   :  { %v1133_v41 = vmax.f32 %v1123_v2, 0.0 }
 0x5a5   :  { %v1131_v43 = vmax.f32 %v1115_v1, 0.0 }
 0x5a6   :  { %v1137_v44 = vpack.c.bf16 %v1133_v41, %v1132_v40 }
 0x5a7   :  { %v1136_v46 = vpack.c.bf16 %v1131_v43, %v1130_v42 }
 0x5a9   :  { %1730 = vmatprep.mubr.bf16.mxu1 %v1136_v46 }
 0x5aa   :  { %1731 = vmatmul.mubr.bf16.gmra.mrb[44].mxu1 %v1137_v44 }
 0x675   :  { %v1728_v47 = vpop.f32.mrb[40].mxu1 }
 0x676   :  { %v1252_v10 = vadd.f32 %v1728_v47, %v1440_v0  ;;  %v1243_v6 = vpop.f32.mrb[41].mxu1 }
 0x677   :  { %v1244_v45 = vadd.f32 %v1440_v0, %v1243_v6  ;;  %v1729_v11 = vpop.f32.mrb[42].mxu1 }
 0x678   :  { %1278 = vmax.xlane.f32.xlu1 %v1252_v10  ;;  %v1246_v7 = vpop.f32.mrb[43].mxu1  ;;  %v1255_v49 = vadd.f32 %v1729_v11, %v1440_v0 }
 0x679   :  { %1274 = vmax.xlane.f32.xlu0 %v1244_v45  ;;  %v1247_v50 = vadd.f32 %v1440_v0, %v1246_v7 }
 0x67c   :  { %1280 = vmax.xlane.f32.xlu1 %v1255_v49 }
 0x67d   :  { %1276 = vmax.xlane.f32.xlu0 %v1247_v50  ;;  %v1732_v8 = vpop.f32.mrb[44].mxu1 }
 0x67e   :  { %v1259_v48 = vpop.f32.mrb[45].mxu1  ;;  %v1268_v14 = vadd.f32 %v1732_v8, %v1440_v0 }
 0x67f   :  { %v1260_v62 = vadd.f32 %v1440_v0, %v1259_v48  ;;  %v1733_v53 = vpop.f32.mrb[46].mxu1 }
 0x680   :  { %v1262_v60 = vpop.f32.mrb[47].mxu1  ;;  %v1271_v51 = vadd.f32 %v1733_v53, %v1440_v0 }
 0x681   :  { %v1263_v52 = vadd.f32 %v1440_v0, %v1262_v60  ;;  %1282 = vmax.xlane.f32.xlu0 %v1260_v62 }
 0x683   :  { %1284 = vmax.xlane.f32.xlu1 %v1263_v52 }
 0x685   :  { %1286 = vmax.xlane.f32.xlu0 %v1268_v14 }
 0x687   :  { %1288 = vmax.xlane.f32.xlu1 %v1271_v51 }
 0x705   :  { %v1279_v59 = vpop.xlane.xlu1 %1278 }
 0x706   :  { %v2270_v56 = vsub.f32 %v1252_v10, %v1279_v59  ;;  %v1275_v54 = vpop.xlane.xlu0 %1274 }
 0x707   :  { %v2272_v55 = vsub.f32 %v1244_v45, %v1275_v54 }
 0x708   :  { %v1302_v15 = vmul.f32 1.442695, %v2270_v56 }
 0x709   :  { %v1298_v58 = vmul.f32 1.442695, %v2272_v55  ;;  %v1281_v20 = vpop.xlane.xlu1 %1280 }
 0x70a   :  { %1795 = vpow2.f32 %v1302_v15  ;;  %v2276_v61 = vsub.f32 %v1255_v49, %v1281_v20  ;;  %v1277_v57 = vpop.xlane.xlu0 %1276 }
 0x70b   :  { %v2278_v63 = vsub.f32 %v1247_v50, %v1277_v57  ;;  %1797 = vpow2.f32 %v1298_v58 }
 0x70c   :  { %v1304_v5 = vmul.f32 1.442695, %v2276_v61 }
 0x70d   :  { %v1300_v18 = vmul.f32 1.442695, %v2278_v63 }
 0x70e   :  { %1799 = vpow2.f32 %v1304_v5  ;;  %v1283_v13 = vpop.xlane.xlu0 %1282 }
 0x70f   :  { %v2282_v22 = vsub.f32 %v1260_v62, %v1283_v13  ;;  %1801 = vpow2.f32 %v1300_v18 }
 0x710   :  { %v1285_v21 = vpop.xlane.xlu1 %1284 }
 0x711   :  { %v1306_v23 = vmul.f32 1.442695, %v2282_v22  ;;  %v2285_v24 = vsub.f32 %v1263_v52, %v1285_v21 }
 0x712   :  { %v1287_v25 = vpop.xlane.xlu0 %1286 }
 0x713   :  { %1803 = vpow2.f32 %v1306_v23  ;;  %v1308_v3 = vmul.f32 1.442695, %v2285_v24  ;;  %v2288_v9 = vsub.f32 %v1268_v14, %v1287_v25 }
 0x714   :  { %v1796_v12 = vpop.eup %1795  ;;  %v1289_v16 = vpop.xlane.xlu1 %1288 }
 0x715   :  { %1805 = vpow2.f32 %v1308_v3  ;;  %v1310_v19 = vmul.f32 1.442695, %v2288_v9  ;;  %v2291_v26 = vsub.f32 %v1271_v51, %v1289_v16  ;;  %1318 = vadd.xlane.f32.xlu0 %v1796_v12  ;;  %v1798_v28 = vpop.eup %1797 }
 0x717   :  { %1807 = vpow2.f32 %v1310_v19  ;;  %v1312_v29 = vmul.f32 1.442695, %v2291_v26 }
 0x718   :  { %v1800_v31 = vpop.eup %1799 }
 0x719   :  { %1809 = vpow2.f32 %v1312_v29  ;;  %1320 = vadd.xlane.f32.xlu1 %v1800_v31  ;;  %1314 = vadd.xlane.f32.xlu0 %v1798_v28  ;;  %v1802_v32 = vpop.eup %1801 }
 0x71d   :  { %v1804_v34 = vpop.eup %1803  ;;  %1316 = vadd.xlane.f32.xlu1 %v1802_v32 }
 0x71e   :  { %1322 = vadd.xlane.f32.xlu0 %v1804_v34 }
 0x71f   :  { %v1806_v30 = vpop.eup %1805 }
 0x721   :  { %v1808_v35 = vpop.eup %1807  ;;  %1324 = vadd.xlane.f32.xlu1 %v1806_v30 }
 0x722   :  { %1326 = vadd.xlane.f32.xlu0 %v1808_v35 }
 0x723   :  { %v1810_v17 = vpop.eup %1809 }
 0x725   :  { %1328 = vadd.xlane.f32.xlu1 %v1810_v17 }
 0x7a2   :  { %v1319_v36 = vpop.xlane.xlu0 %1318 }
 0x7a3   :  { %1811 = vlog2.f32 %v1319_v36 }
 0x7a6   :  { %v1321_v37 = vpop.xlane.xlu1 %1320  ;;  %v1315_v33 = vpop.xlane.xlu0 %1314 }
 0x7a7   :  { %1813 = vlog2.f32 %v1321_v37 }
 0x7a8   :  { %1815 = vlog2.f32 %v1315_v33 }
 0x7aa   :  { %v1317_v38 = vpop.xlane.xlu1 %1316 }
 0x7ab   :  { %1817 = vlog2.f32 %v1317_v38  ;;  %v1323_v39 = vpop.xlane.xlu0 %1322 }
 0x7ac   :  { %1819 = vlog2.f32 %v1323_v39 }
 0x7ad   :  { %v1812_v27 = vpop.eup %1811 }
 0x7ae   :  { %v1335_v2 = vmul.f32 0.6931472, %v1812_v27  ;;  %v1325_v4 = vpop.xlane.xlu1 %1324 }
 0x7af   :  { %1821 = vlog2.f32 %v1325_v4  ;;  %v1327_v1 = vpop.xlane.xlu0 %1326 }
 0x7b0   :  { %v1348_v40 = vsub.f32 %v2270_v56, %v1335_v2  ;;  %1823 = vlog2.f32 %v1327_v1 }
 0x7b1   :  { %v1814_v41 = vpop.eup %1813 }
 0x7b2   :  { %v1816_v42 = vpop.eup %1815  ;;  %1356 = vst [vmem:[%s2334_s8 + $0x10] sm:$0xff] %v1348_v40  ;;  %v1337_v43 = vmul.f32 0.6931472, %v1814_v41  ;;  %v1329_v44 = vpop.xlane.xlu1 %1328 }
 0x7b3   :  { %v1331_v46 = vmul.f32 0.6931472, %v1816_v42  ;;  %1825 = vlog2.f32 %v1329_v44 }
 0x7b4   :  { %v1349_v0 = vsub.f32 %v2276_v61, %v1337_v43 }
 0x7b5   :  { %v1818_v47 = vpop.eup %1817  ;;  %v1346_v10 = vsub.f32 %v2272_v55, %v1331_v46 }
 0x7b6   :  { %v1820_v6 = vpop.eup %1819  ;;  %1357 = vst [vmem:[%s2334_s8 + $0x18] sm:$0xff] %v1349_v0  ;;  %v1333_v45 = vmul.f32 0.6931472, %v1818_v47 }
 0x7b7   :  { %1354 = vst [vmem:[%s2334_s8] sm:$0xff] %v1346_v10  ;;  %v1339_v11 = vmul.f32 0.6931472, %v1820_v6 }
 0x7b8   :  { %v1347_v7 = vsub.f32 %v2278_v63, %v1333_v45 }
 0x7b9   :  { %v1822_v49 = vpop.eup %1821  ;;  %v1350_v50 = vsub.f32 %v2282_v22, %v1339_v11 }
 0x7ba   :  { %v1824_v8 = vpop.eup %1823  ;;  %1355 = vst [vmem:[%s2334_s8 + $0x8] sm:$0xff] %v1347_v7  ;;  %v1341_v48 = vmul.f32 0.6931472, %v1822_v49 }
 0x7bb   :  { %1358 = vst [vmem:[%s2334_s8 + $0x20] sm:$0xff] %v1350_v50  ;;  %v1343_v62 = vmul.f32 0.6931472, %v1824_v8 }
 0x7bc   :  { %v1351_v53 = vsub.f32 %v2285_v24, %v1341_v48 }
 0x7bd   :  { %v1826_v60 = vpop.eup %1825  ;;  %v1352_v52 = vsub.f32 %v2288_v9, %v1343_v62 }
 0x7be   :  { %1359 = vst [vmem:[%s2334_s8 + $0x28] sm:$0xff] %v1351_v53  ;;  %v1345_v14 = vmul.f32 0.6931472, %v1826_v60 }
 0x7bf   :  { %1360 = vst [vmem:[%s2334_s8 + $0x30] sm:$0xff] %v1352_v52 }
 0x7c0   :  { %v1353_v51 = vsub.f32 %v2291_v26, %v1345_v14 }
 0x7c2   :  { %1361 = vst [vmem:[%s2334_s8 + $0x38] sm:$0xff] %v1353_v51 }
 0x7c3   :  { %1366 = vsyncpa [#allocation6], 1 }
 0x7c4   :  { %1367 = vsyncpa [#allocation8], 1 }
 0x7c5   :  { %1368 = vsyncmov [#allocation4] }
 0x7c8   :  { %s1369_s23 = vpop.sfrf %1368 }
 0x7c9   :  { %p1449_p10 = scmp.ne.s32.totalorder %s1369_s23, 0 }
 0x7cb   :  { %1373 = shalt.err (%p1449_p10)  }

</bundles_post_ra>
